<compile_context>
chip_gen: v6e
topology: v6e:2x2x1
jax: 0.10.0
libtpu: 0.0.40
codegen_flags: <defaults>
</compile_context>

<pallas_src>
import functools

import jax
import jax.numpy as jnp
from jax.experimental import pallas as pl
from jax.experimental.pallas import tpu as pltpu


def _round_up(v, m):
    return (v + m - 1) // m * m


# ----------------------------- Pallas kernel -------------------------------- #
def _laplace_kernel(coef_ref, layout_ref, heat_ref, out_ref, *, w_shift, n_lanes):
    """coef: shared (8, L) rows [w', c_u', c_d', c_b', c_f', G*cof, 0, 0];
    layout/heat/out: (TB, L) batch-chunk blocks (row-flattened (H, W) fields)."""
    h = heat_ref[...]                                   # (TB, L)
    # 5-point stencil neighbours via circular lane rotations (XLU slot, which
    # is otherwise idle here).  Boundary duplication, the BC mask G and cof are
    # all folded into the precomputed coefficient rows, so every wrap-around
    # read is multiplied by an exactly-zero coefficient.
    h_u = pltpu.roll(h, w_shift, axis=1)                # heat[i-1, j]
    h_d = pltpu.roll(h, n_lanes - w_shift, axis=1)      # heat[i+1, j]
    h_b = pltpu.roll(h, 1, axis=1)                      # heat[i, j-1]
    h_f = pltpu.roll(h, n_lanes - 1, axis=1)            # heat[i, j+1]
    out_ref[...] = (coef_ref[0:1, :] * h
                    + coef_ref[1:2, :] * h_u
                    + coef_ref[2:3, :] * h_d
                    + coef_ref[3:4, :] * h_b
                    + coef_ref[4:5, :] * h_f
                    + coef_ref[5:6, :] * layout_ref[...])


def laplace_pallas(coef, layout, heat, *, width, max_tile_bytes=1 * 1024 * 1024):
    """coef: (8, L) packed shared rows; layout, heat: (B, L).  Returns (B, L)."""
    B, L = heat.shape
    itemsize = jnp.dtype(heat.dtype).itemsize

    # Per-block byte budget, clamped to 2 MiB so the double-buffered working
    # set (3 streamed arrays x 2 buffers) stays <= ~12 MiB on every TPU gen.
    budget = min(int(max_tile_bytes), 2 * 1024 * 1024)
    tb = max(8, budget // (L * itemsize) // 8 * 8)      # multiple of 8 sublanes
    # For large batches keep >= ~4 grid steps so DMA-in of step i+1 and
    # writeback of step i-1 overlap compute of step i, and so v7x can shard
    # chunks across its two TensorCores.
    if B > 4 * 8:
        tb = min(tb, _round_up(pl.cdiv(B, 4), 8))
    if tb >= B:
        tb = B                       # one block covers the whole (small) batch

    grid = (pl.cdiv(B, tb),)         # partial last block handled by Pallas:
                                     # rows are independent, OOB writes dropped

    per_batch = pl.BlockSpec((tb, L), lambda b: (b, 0))
    shared = pl.BlockSpec((8, L), lambda b: (0, 0))     # constant index: resident

    cost = pl.CostEstimate(
        flops=11 * B * L,                                # 6 mul + 5 add / element
        transcendentals=0,
        bytes_accessed=(3 * B * L + 8 * L) * itemsize)

    kernel = functools.partial(_laplace_kernel, w_shift=int(width),
                               n_lanes=int(L))
    return pl.pallas_call(
        kernel,
        out_shape=jax.ShapeDtypeStruct((B, L), heat.dtype),
        grid=grid,
        in_specs=[shared, per_batch, per_batch],
        out_specs=per_batch,
        compiler_params=pltpu.CompilerParams(
            dimension_semantics=("parallel",)),
        cost_estimate=cost,
    )(coef, layout, heat)


# -------------------------- Module-equivalent wrapper ------------------------ #
class LaplaceUnuniform:
    """JAX/Pallas port of Laplace_ununiform (forward semantics only)."""

    def __init__(self, nx=21, length=0.1, batch_size=32, bcs=None, xs=None, ys=None,
                 max_tile_bytes=1 * 1024 * 1024):
        assert xs is not None and ys is not None
        self.length = length
        self.bcs = bcs
        self.nx = nx
        self.cof = 1.0
        self.batch_size = batch_size
        self.max_tile_bytes = max_tile_bytes

        xs = jnp.asarray(xs, jnp.float32)
        ys = jnp.asarray(ys, jnp.float32)
        H, W = xs.shape
        assert H >= 2 and W >= 2
        self.H, self.W = H, W
        self.L = H * W   # full last-dim block; pick H*W % 128 == 0 at data-prep
                         # time for fully unmasked (lane-dense) stores.

        w, a_m, a_p, b_m, b_p = self._pre_coef(xs, ys)
        # Raw (H, W) coefficients kept for the pure-JAX reference.
        self.w, self.a_m, self.a_p, self.b_m, self.b_p = w, a_m, a_p, b_m, b_p

        # Boundary-condition 0/1 mask (batch independent).
        self.G = self._make_G(H, W)

        # Fold jacobi()'s edge-duplication rules into effective neighbour
        # coefficients (so the kernel only needs circular rolls):
        #   x_u[0] = x[1] -> its a_m weight moves onto the x[i+1] read, etc.
        row = jnp.arange(H, dtype=jnp.float32)[:, None]
        col = jnp.arange(W, dtype=jnp.float32)[None, :]
        is_r0 = (row == 0).astype(jnp.float32)
        is_rl = (row == H - 1).astype(jnp.float32)
        is_c0 = (col == 0).astype(jnp.float32)
        is_cl = (col == W - 1).astype(jnp.float32)
        c_u = a_m * (1.0 - is_r0) + a_p * is_rl      # multiplies heat[i-1, j]
        c_d = a_p * (1.0 - is_rl) + a_m * is_r0      # multiplies heat[i+1, j]
        c_b = b_m * (1.0 - is_c0) + b_p * is_cl      # multiplies heat[i, j-1]
        c_f = b_p * (1.0 - is_cl) + b_m * is_c0      # multiplies heat[i, j+1]

        # Fold G (0/1 mask, so G**2 == G) and cof into the coefficients too:
        # out = G*(w*(G*heat) + c_k*(G*heat)[read_k] + cof*layout)
        #     = (G*w)*heat + (G*c_k*G_read_k)*heat_read_k + (G*cof)*layout
        G = self.G
        w_eff = G * w
        cu_eff = G * c_u * jnp.roll(G, 1, axis=0)    # G at the i-1 read location
        cd_eff = G * c_d * jnp.roll(G, -1, axis=0)   # G at the i+1 read location
        cb_eff = G * c_b * jnp.roll(G, 1, axis=1)    # G at the j-1 read location
        cf_eff = G * c_f * jnp.roll(G, -1, axis=1)   # G at the j+1 read location
        gcof = G * self.cof

        rows = [w_eff, cu_eff, cd_eff, cb_eff, cf_eff, gcof]
        coef = jnp.stack([r.reshape(self.L) for r in rows], axis=0)      # (6, L)
        coef = jnp.concatenate(
            [coef, jnp.zeros((2, self.L), jnp.float32)], axis=0)         # (8, L)
        self._coef = coef.astype(jnp.float32)

    # -------- coefficient precomputation (host-side glue, plain JAX) -------- #
    @staticmethod
    def _pre_hx(xs):
        hx = xs[1:, :] - xs[:-1, :]
        hx_id1 = jnp.concatenate([hx[0:1, :], hx], axis=0)
        hx_i = jnp.concatenate([hx, hx[-1:, :]], axis=0)
        return hx_id1, hx_i

    @staticmethod
    def _pre_hy(ys):
        hy = ys[:, 1:] - ys[:, :-1]
        hy_jd1 = jnp.concatenate([hy[:, 0:1], hy], axis=1)
        hy_j = jnp.concatenate([hy, hy[:, -1:]], axis=1)
        return hy_jd1, hy_j

    def _pre_coef(self, xs, ys):
        hx_id1, hx_i = self._pre_hx(xs)
        hy_jd1, hy_j = self._pre_hy(ys)
        w = (2.0 / (hx_i + hx_id1) * (-1.0 / hx_i + -1.0 / hx_id1)
             + 2.0 / (hy_j + hy_jd1) * (-1.0 / hy_j + -1.0 / hy_jd1))
        a_m = 2.0 / (hx_i + hx_id1) * (1.0 / hx_id1)
        a_p = 2.0 / (hx_i + hx_id1) * (1.0 / hx_i)
        b_m = 2.0 / (hy_j + hy_jd1) * (1.0 / hy_jd1)
        b_p = 2.0 / (hy_j + hy_jd1) * (1.0 / hy_j)
        return w, a_m, a_p, b_m, b_p

    def _make_G(self, H, W):
        G = jnp.ones((H, W), jnp.float32)
        if self.bcs is None or len(self.bcs) == 0 or len(self.bcs[0]) == 0:
            return G
        for bc in self.bcs:
            if bc[0][1] == 0 and bc[1][1] == 0:
                # Hard-coded override inherited from the reference module;
                # out of range for small nx (JAX .at clamps silently).
                idx_start, idx_end = 79, 121
                G = G.at[idx_start:idx_end, :1].set(0.0)
            elif bc[0][1] == self.length and bc[1][1] == self.length:
                idx_start = round(bc[0][0] * self.nx / self.length)
                idx_end = round(bc[1][0] * self.nx / self.length)
                G = G.at[idx_start:idx_end, -1:].set(0.0)
            elif bc[0][0] == 0 and bc[1][0] == 0:
                idx_start = round(bc[0][1] * self.nx / self.length)
                idx_end = round(bc[1][1] * self.nx / self.length)
                G = G.at[:1, idx_start:idx_end].set(0.0)
            elif bc[0][0] == self.length and bc[1][0] == self.length:
                idx_start = round(bc[0][1] * self.nx / self.length)
                idx_end = round(bc[1][1] * self.nx / self.length)
                G = G.at[-1:, idx_start:idx_end].set(0.0)
            else:
                raise ValueError('bc error!')
        return G

    # ------------------------------- forward -------------------------------- #
    def __call__(self, layout, heat):
        B, C, H, W = heat.shape
        assert C == 1 and (H, W) == (self.H, self.W)
        lay2 = layout.reshape(B, self.L).astype(jnp.float32)
        heat2 = heat.reshape(B, self.L).astype(jnp.float32)
        out = laplace_pallas(self._coef, lay2, heat2, width=W,
                             max_tile_bytes=self.max_tile_bytes)
        return out.reshape(B, 1, H, W).astype(heat.dtype)


# ------------------------------ pure-JAX reference --------------------------- #
def _reference_forward(model, layout, heat):
    f = model.cof * layout
    G = jnp.broadcast_to(model.G[None, None], heat.shape)
    x = G * heat
    x_f = jnp.concatenate([x[:, :, :, 1:], x[:, :, :, -2:-1]], axis=3)
    x_b = jnp.concatenate([x[:, :, :, 1:2], x[:, :, :, :-1]], axis=3)
    x_u = jnp.concatenate([x[:, :, 1:2, :], x[:, :, :-1, :]], axis=2)
    x_d = jnp.concatenate([x[:, :, 1:, :], x[:, :, -2:-1, :]], axis=2)
    y = (model.w[None, None] * x + model.a_m[None, None] * x_u
         + model.a_p[None, None] * x_d + model.b_m[None, None] * x_b
         + model.b_p[None, None] * x_f)
    return G * (y + f)


if __name__ == "__main__":
    nx = 16          # n_x == n_y == 16; H*W = 256 lanes (lane-dense blocks)
    length = 0.1
    key = jax.random.PRNGKey(0)

    # Deterministic non-uniform grid coordinates xs[i, j] = x_i, ys[i, j] = y_j.
    t = jnp.linspace(0.0, 1.0, nx, dtype=jnp.float32)
    x1d = length * t ** 1.5
    y1d = length * jnp.sqrt(t)
    xs = jnp.tile(x1d[:, None], (1, nx))
    ys = jnp.tile(y1d[None, :], (nx, 1))

    k1, k2, k3, k4, k5, k6 = jax.random.split(key, 6)

    # Case 1: tiny batch, no BCs -> single grid step covering the whole batch.
    B1 = 2
    model1 = LaplaceUnuniform(nx=nx, length=length, batch_size=B1,
                              bcs=None, xs=xs, ys=ys)
    layout1 = jax.random.normal(k1, (B1, 1, nx, nx), dtype=jnp.float32)
    heat1 = jax.random.normal(k2, (B1, 1, nx, nx), dtype=jnp.float32)
    out1 = jax.block_until_ready(model1(layout1, heat1))
    ref1 = _reference_forward(model1, layout1, heat1)
    assert out1.shape == (B1, 1, nx, nx)
    assert jnp.allclose(out1, ref1, rtol=1e-4, atol=1e-2), "mismatch (case 1)"

    # Case 2: larger batch with a tiny tile budget to exercise batch chunking
    # and the partial last block (tb = 8 sublanes, grid of 3 steps, B=20).
    B2 = 20
    model2 = LaplaceUnuniform(nx=nx, length=length, batch_size=B2,
                              bcs=None, xs=xs, ys=ys,
                              max_tile_bytes=8 * 256 * 4)
    layout2 = jax.random.normal(k3, (B2, 1, nx, nx), dtype=jnp.float32)
    heat2 = jax.random.normal(k4, (B2, 1, nx, nx), dtype=jnp.float32)
    out2 = jax.block_until_ready(model2(layout2, heat2))
    ref2 = _reference_forward(model2, layout2, heat2)
    assert out2.shape == (B2, 1, nx, nx)
    assert jnp.allclose(out2, ref2, rtol=1e-4, atol=1e-2), "mismatch (case 2)"

    # Case 3: non-trivial boundary-condition mask (x == length edge) to
    # validate the G/cof folding into the coefficient rows.
    B3 = 12
    bcs = [[[0.1, 0.02], [0.1, 0.06]]]
    model3 = LaplaceUnuniform(nx=nx, length=length, batch_size=B3,
                              bcs=bcs, xs=xs, ys=ys)
    layout3 = jax.random.normal(k5, (B3, 1, nx, nx), dtype=jnp.float32)
    heat3 = jax.random.normal(k6, (B3, 1, nx, nx), dtype=jnp.float32)
    out3 = jax.block_until_ready(model3(layout3, heat3))
    ref3 = _reference_forward(model3, layout3, heat3)
    assert out3.shape == (B3, 1, nx, nx)
    assert jnp.allclose(out3, ref3, rtol=1e-4, atol=1e-2), "mismatch (case 3)"

    print("KERNEL_OK")
</pallas_src>

<mosaic_0001>
module attributes {stable_mosaic.version = 11 : i64} {
  func.func @_laplace_kernel(%arg0: i32, %arg1: memref<8x256xf32, #tpu.memory_space<vmem>>, %arg2: memref<2x256xf32, #tpu.memory_space<vmem>>, %arg3: memref<2x256xf32, #tpu.memory_space<vmem>>, %arg4: memref<2x256xf32, #tpu.memory_space<vmem>>) attributes {dimension_semantics = [#tpu.dimension_semantics<parallel>], iteration_bounds = array<i64: 1>, scalar_prefetch = 0 : i64, scratch_operands = 0 : i64, tpu.core_type = #tpu.core_type<tc>, window_params = [{pipeline_mode = #tpu.pipeline_mode<synchronous>, transform_indices = @transform_0, window_bounds = array<i64: 8, 256>}, {transform_indices = @transform_1, window_bounds = array<i64: 2, 256>}, {transform_indices = @transform_2, window_bounds = array<i64: 2, 256>}, {transform_indices = @transform_3, window_bounds = array<i64: 2, 256>}]} {
    %c0 = arith.constant 0 : index
    %c0_0 = arith.constant 0 : index
    %0 = vector.load %arg3[%c0, %c0_0] : memref<2x256xf32, #tpu.memory_space<vmem>>, vector<2x256xf32>
    %c16_i32 = arith.constant 16 : i32
    %1 = tpu.dynamic_rotate %0 by %c16_i32 dim 1 : vector<2x256xf32>, i32 -> vector<2x256xf32>
    %c240_i32 = arith.constant 240 : i32
    %2 = tpu.dynamic_rotate %0 by %c240_i32 dim 1 : vector<2x256xf32>, i32 -> vector<2x256xf32>
    %c1_i32 = arith.constant 1 : i32
    %3 = tpu.dynamic_rotate %0 by %c1_i32 dim 1 : vector<2x256xf32>, i32 -> vector<2x256xf32>
    %c255_i32 = arith.constant 255 : i32
    %4 = tpu.dynamic_rotate %0 by %c255_i32 dim 1 : vector<2x256xf32>, i32 -> vector<2x256xf32>
    %c0_1 = arith.constant 0 : index
    %c0_2 = arith.constant 0 : index
    %5 = vector.load %arg1[%c0_1, %c0_2] : memref<8x256xf32, #tpu.memory_space<vmem>>, vector<1x256xf32>
    %6 = vector.broadcast %5 : vector<1x256xf32> to vector<2x256xf32>
    %7 = arith.mulf %6, %0 : vector<2x256xf32>
    %c1 = arith.constant 1 : index
    %c0_3 = arith.constant 0 : index
    %8 = vector.load %arg1[%c1, %c0_3] : memref<8x256xf32, #tpu.memory_space<vmem>>, vector<1x256xf32>
    %9 = vector.broadcast %8 : vector<1x256xf32> to vector<2x256xf32>
    %10 = arith.mulf %9, %1 : vector<2x256xf32>
    %11 = arith.addf %7, %10 : vector<2x256xf32>
    %c2 = arith.constant 2 : index
    %c0_4 = arith.constant 0 : index
    %12 = vector.load %arg1[%c2, %c0_4] : memref<8x256xf32, #tpu.memory_space<vmem>>, vector<1x256xf32>
    %13 = vector.broadcast %12 : vector<1x256xf32> to vector<2x256xf32>
    %14 = arith.mulf %13, %2 : vector<2x256xf32>
    %15 = arith.addf %11, %14 : vector<2x256xf32>
    %c3 = arith.constant 3 : index
    %c0_5 = arith.constant 0 : index
    %16 = vector.load %arg1[%c3, %c0_5] : memref<8x256xf32, #tpu.memory_space<vmem>>, vector<1x256xf32>
    %17 = vector.broadcast %16 : vector<1x256xf32> to vector<2x256xf32>
    %18 = arith.mulf %17, %3 : vector<2x256xf32>
    %19 = arith.addf %15, %18 : vector<2x256xf32>
    %c4 = arith.constant 4 : index
    %c0_6 = arith.constant 0 : index
    %20 = vector.load %arg1[%c4, %c0_6] : memref<8x256xf32, #tpu.memory_space<vmem>>, vector<1x256xf32>
    %21 = vector.broadcast %20 : vector<1x256xf32> to vector<2x256xf32>
    %22 = arith.mulf %21, %4 : vector<2x256xf32>
    %23 = arith.addf %19, %22 : vector<2x256xf32>
    %c5 = arith.constant 5 : index
    %c0_7 = arith.constant 0 : index
    %24 = vector.load %arg1[%c5, %c0_7] : memref<8x256xf32, #tpu.memory_space<vmem>>, vector<1x256xf32>
    %c0_8 = arith.constant 0 : index
    %c0_9 = arith.constant 0 : index
    %25 = vector.load %arg2[%c0_8, %c0_9] : memref<2x256xf32, #tpu.memory_space<vmem>>, vector<2x256xf32>
    %26 = vector.broadcast %24 : vector<1x256xf32> to vector<2x256xf32>
    %27 = arith.mulf %26, %25 : vector<2x256xf32>
    %28 = arith.addf %23, %27 : vector<2x256xf32>
    %c0_10 = arith.constant 0 : index
    %c0_11 = arith.constant 0 : index
    %29 = vector.load %arg4[%c0_10, %c0_11] : memref<2x256xf32, #tpu.memory_space<vmem>>, vector<2x256xf32>
    tpu.vector_store %arg4[%c0_10, %c0_11], %28 {strides = array<i32>} : memref<2x256xf32, #tpu.memory_space<vmem>>, vector<2x256xf32>,
    return
  }
  func.func @transform_0(%arg0: i32) -> (i32, i32) {
    %c0_i32 = arith.constant 0 : i32
    %c0_i32_0 = arith.constant 0 : i32
    %c0_i32_1 = arith.constant 0 : i32
    return %c0_i32, %c0_i32_0 : i32, i32
  }
  func.func @transform_1(%arg0: i32) -> (i32, i32) {
    %c0_i32 = arith.constant 0 : i32
    %c0_i32_0 = arith.constant 0 : i32
    return %arg0, %c0_i32 : i32, i32
  }
  func.func @transform_2(%arg0: i32) -> (i32, i32) {
    %c0_i32 = arith.constant 0 : i32
    %c0_i32_0 = arith.constant 0 : i32
    return %arg0, %c0_i32 : i32, i32
  }
  func.func @transform_3(%arg0: i32) -> (i32, i32) {
    %c0_i32 = arith.constant 0 : i32
    %c0_i32_0 = arith.constant 0 : i32
    return %arg0, %c0_i32 : i32, i32
  }
}

</mosaic_0001>

<bundles_post_ra>
// kernel: tpu_custom_call.1
= control target key start
LH: loop header
LB: loop body
LE: loop exit
PB: predicated region body
PF: predicated region fallthrough
CT: control target
= control target key end

     0   :  { %8 = vsyncpa [#allocation3], 0  ;;  %s374_s0 = inlined_call_operand.hbm [shape: f32[8,256], index: 0, kind: input, shape index: {}]   ;;  %s375_s1 = inlined_call_operand.hbm [shape: f32[2,256], index: 1, kind: input, shape index: {}]   ;;  %s376_s2 = inlined_call_operand.hbm [shape: f32[2,256], index: 2, kind: input, shape index: {}]   ;;  %s377_s3 = inlined_call_operand.hbm [shape: f32[2,256], index: 3, kind: output, shape index: {}]  }
   0x1   :  { %9 = vsyncpa [#allocation6], 0 }
   0x2   :  { %10 = vsyncpa [#allocation4], 0  ;;  %s328_s12 = smov [#allocation5]   ;;  %s329_s14 = smov [#allocation2]  }
   0x3   :  { %s27_s13 = sshll.u32 %s328_s12, 4  ;;  %s17_s15 = sshll.u32 %s329_s14, 4  ;;  %s28_s13 = int_to_ptr.vmem [resolvable:$true] %s27_s13  ;;  %s18_s15 = int_to_ptr.vmem [resolvable:$true] %s17_s15 }
   0x4   :  { %s250_s16 = scalar_lea.vmem %s28_s13, 64  ;;  %p255_p1 = scmp.lt.s32.totalorder %s28_s13, %s28_s13 }
   0x5   :  { %p251_p0 = scmp.ne.s32.totalorder %s28_s13, %s250_s16  ;;  %p256_p2 = scmp.lt.s32.totalorder %s250_s16, %s250_s16 }
   0x7   :  { %p257_p3 = por %p256_p2, %p255_p1 }
   0x9   :  { %p258_p4 = pnand %p257_p3, %p251_p0 }
   0xb   :  { %261 = shalt.err (!%p258_p4)
}
   0xc   :  { %30 = dma.hbm_to_vmem [thread:$0]  %s375_s1, 64, %s28_s13, [#allocation6]  }
   0xd   :  { %s270_s19 = scalar_lea.vmem %s18_s15, 256  ;;  %p275_p6 = scmp.lt.s32.totalorder %s18_s15, %s18_s15 }
   0xe   :  { %p271_p5 = scmp.ne.s32.totalorder %s18_s15, %s270_s19  ;;  %p276_p7 = scmp.lt.s32.totalorder %s270_s19, %s270_s19 }
  0x10   :  { %p277_p8 = por %p276_p7, %p275_p6 }
  0x12   :  { %p278_p9 = pnand %p277_p8, %p271_p5 }
  0x14   :  { %281 = shalt.err (!%p278_p9)
}
  0x15   :  { %20 = dma.hbm_to_vmem [thread:$0]  %s374_s0, 256, %s18_s15, [#allocation3]  }
  0x16   :  { %s330_s22 = smov [#allocation7]  }
  0x17   :  { %s37_s23 = sshll.u32 %s330_s22, 4  ;;  %s38_s23 = int_to_ptr.vmem [resolvable:$true] %s37_s23 }
  0x18   :  { %s290_s24 = scalar_lea.vmem %s38_s23, 64  ;;  %p295_p11 = scmp.lt.s32.totalorder %s38_s23, %s38_s23 }
  0x19   :  { %p291_p10 = scmp.ne.s32.totalorder %s38_s23, %s290_s24  ;;  %p296_p12 = scmp.lt.s32.totalorder %s290_s24, %s290_s24 }
  0x1b   :  { %p297_p13 = por %p296_p12, %p295_p11 }
  0x1d   :  { %p298_p0 = pnand %p297_p13, %p291_p10 }
  0x1f   :  { %301 = shalt.err (!%p298_p0)
}
  0x20   :  { %40 = dma.hbm_to_vmem [thread:$0]  %s376_s2, 64, %s38_s23, [#allocation6]  }
  0x21   :  { %322 = dma.done.wait [#allocation3], 256  }
  0x22   :  { %323 = vsyncadd [#allocation3], 4294967040 }
  0x23   :  { %324 = dma.done.wait [#allocation6], 128  }
  0x24   :  { %325 = vsyncadd [#allocation6], 4294967168  ;;  %v231_v0 = vld.sshfl [vmem:[#allocation7] sm:$0x33 pattern:$0x76325410]  ;;  %v66_v2 = vlaneseq }
  0x25   :  { %s331_s0 = smov 112   ;;  %s332_s26 = smov 16   ;;  %v59_v1 = vcombine.high %v231_v0, %v231_v0  ;;  %v92_v6 = vld [vmem:[#allocation2] ss:$8 sm:$0x3] }
  0x26   :  { %71 = vrot.lane.b32.xlu1 %v231_v0, %s331_s0  ;;  %62 = vrot.lane.b32.xlu0 %v231_v0, %s332_s26  ;;  %s333_s27 = smov 1   ;;  %s334_s28 = smov 127   ;;  %v95_v3 = vshrl.u32 %v66_v2, 7  ;;  %v67_v7 = vand.u32 127, %v66_v2 }
  0x27   :  { %v107_v8 = vld [vmem:[#allocation2 + $0x1] ss:$8 sm:$0x3]  ;;  %v124_v13 = vld [vmem:[#allocation2 + $0x2] ss:$8 sm:$0x3] }
  0x28   :  { %v96_v4 = vsub.s32 0, %v95_v3  ;;  %v100_v5 = vsub.s32 1, %v95_v3  ;;  %vm75_vm0 = vcmp.lt.s32.totalorder %v67_v7, 112  ;;  %vm68_vm1 = vcmp.lt.s32.totalorder %v67_v7, 16  ;;  %s335_s2 = smov [#allocation8]  }
  0x29   :  { %vm82_vm2 = vcmp.lt.s32.totalorder %v67_v7, 1  ;;  %v141_v16 = vld [vmem:[#allocation2 + $0x3] ss:$8 sm:$0x3]  ;;  %vm89_vm3 = vcmp.lt.s32.totalorder %v67_v7, 127  ;;  %s221_s29 = sshll.u32 %s335_s2, 4  ;;  %s222_s29 = int_to_ptr.vmem [resolvable:$true] %s221_s29 }
  0x2a   :  { %73 = vrot.lane.b32.xlu1 %v59_v1, %s331_s0  ;;  %64 = vrot.lane.b32.xlu0 %v59_v1, %s332_s26  ;;  %v97_v11 = vrot.slane %v92_v6, %v96_v4  ;;  %v101_v12 = vrot.slane %v92_v6, %v100_v5  ;;  %v112_v14 = vrot.slane %v107_v8, %v96_v4  ;;  %v158_v23 = vld [vmem:[#allocation2 + $0x4] ss:$8 sm:$0x3]  ;;  %v175_v24 = vld [vmem:[#allocation2 + $0x5] ss:$8 sm:$0x3]  ;;  %p307_p2 = scmp.lt.s32.totalorder %s222_s29, %s222_s29 }
  0x2b   :  { %v116_v15 = vrot.slane %v107_v8, %v100_v5  ;;  %v129_v17 = vrot.slane %v124_v13, %v96_v4  ;;  %v133_v18 = vrot.slane %v124_v13, %v100_v5  ;;  %v146_v31 = vrot.slane %v141_v16, %v96_v4  ;;  %v232_v33 = vld.sshfl [vmem:[#allocation5] sm:$0x33 pattern:$0x76325410]  ;;  %s302_s30 = scalar_lea.vmem %s222_s29, 64 }
  0x2c   :  { %v104_v20 = vmul.f32 %v231_v0, %v97_v11  ;;  %v105_v22 = vmul.f32 %v101_v12, %v59_v1  ;;  %v150_v32 = vrot.slane %v141_v16, %v100_v5  ;;  %v163_v34 = vrot.slane %v158_v23, %v96_v4  ;;  %p303_p1 = scmp.ne.s32.totalorder %s222_s29, %s302_s30  ;;  %p308_p3 = scmp.lt.s32.totalorder %s302_s30, %s302_s30 }
  0x2d   :  { %v167_v35 = vrot.slane %v158_v23, %v100_v5  ;;  %v181_v36 = vrot.slane %v175_v24, %v96_v4  ;;  %v185_v45 = vrot.slane %v175_v24, %v100_v5  ;;  %v196_v46 = vcombine.high %v232_v33, %v232_v33 }
  0x2e   :  { %80 = vrot.lane.b32.xlu1 %v59_v1, %s333_s27  ;;  %78 = vrot.lane.b32.xlu0 %v231_v0, %s333_s27  ;;  %p309_p4 = por %p308_p3, %p307_p2 }
  0x2f   :  { %v199_v55 = vmul.f32 %v232_v33, %v181_v36  ;;  %v200_v56 = vmul.f32 %v196_v46, %v185_v45 }
  0x30   :  { %p310_p5 = pnand %p309_p4, %p303_p1 }
  0x32   :  { %87 = vrot.lane.b32.xlu1 %v59_v1, %s334_s28  ;;  %85 = vrot.lane.b32.xlu0 %v231_v0, %s334_s28 }
  0x98   :  { %v72_v9 = vpop.permute.xlu1 %71  ;;  %v63_v10 = vpop.permute.xlu0 %62 }
  0x9c   :  { %v74_v19 = vpop.permute.xlu1 %73  ;;  %v65_v21 = vpop.permute.xlu0 %64 }
  0x9d   :  { %v76_v25 = vsel %vm75_vm0, %v72_v9, %v74_v19  ;;  %v77_v26 = vsel %vm75_vm0, %v74_v19, %v72_v9  ;;  %v69_v27 = vsel %vm68_vm1, %v63_v10, %v65_v21  ;;  %v70_v28 = vsel %vm68_vm1, %v65_v21, %v63_v10 }
  0x9e   :  { %v119_v29 = vmul.f32 %v112_v14, %v70_v28  ;;  %v120_v30 = vmul.f32 %v116_v15, %v69_v27  ;;  %v136_v37 = vmul.f32 %v129_v17, %v76_v25  ;;  %v137_v38 = vmul.f32 %v133_v18, %v77_v26 }
  0xa0   :  { %v121_v39 = vadd.f32 %v119_v29, %v104_v20  ;;  %v122_v40 = vadd.f32 %v120_v30, %v105_v22  ;;  %v81_v41 = vpop.permute.xlu1 %80  ;;  %v79_v42 = vpop.permute.xlu0 %78 }
  0xa1   :  { %v83_v43 = vsel %vm82_vm2, %v79_v42, %v81_v41  ;;  %v84_v44 = vsel %vm82_vm2, %v81_v41, %v79_v42 }
  0xa2   :  { %v138_v47 = vadd.f32 %v136_v37, %v121_v39  ;;  %v139_v48 = vadd.f32 %v137_v38, %v122_v40  ;;  %v153_v49 = vmul.f32 %v146_v31, %v84_v44  ;;  %v154_v50 = vmul.f32 %v150_v32, %v83_v43 }
  0xa4   :  { %v88_v51 = vpop.permute.xlu1 %87  ;;  %v86_v52 = vpop.permute.xlu0 %85  ;;  %v155_v57 = vadd.f32 %v153_v49, %v138_v47  ;;  %v156_v58 = vadd.f32 %v154_v50, %v139_v48 }
  0xa5   :  { %v90_v53 = vsel %vm89_vm3, %v86_v52, %v88_v51  ;;  %v91_v54 = vsel %vm89_vm3, %v88_v51, %v86_v52 }
  0xa6   :  { %v170_v59 = vmul.f32 %v163_v34, %v90_v53  ;;  %v171_v60 = vmul.f32 %v167_v35, %v91_v54 }
  0xa8   :  { %v172_v61 = vadd.f32 %v170_v59, %v155_v57  ;;  %v173_v62 = vadd.f32 %v171_v60, %v156_v58 }
  0xaa   :  { %v201_v63 = vadd.f32 %v199_v55, %v172_v61  ;;  %v202_v0 = vadd.f32 %v200_v56, %v173_v62 }
  0xac   :  { %v205_v1 = vcombine.low %v201_v63, %v202_v0 }
  0xae   :  { %233 = vst.sshfl [vmem:[#allocation8] sm:$0x33 pattern:$0x76325410] %v205_v1 }
  0xaf   :  { %313 = shalt.err (!%p310_p5)
}
  0xb0   :  { %224 = dma.vmem_to_hbm [thread:$0]  %s222_s29, 64, %s377_s3, [#allocation4]  }
  0xb1   :  { %326 = dma.done.wait [#allocation4], 64  }
  0xb2   :  { %327 = vsyncadd [#allocation4], 4294967232 }
  0xb3   :  { %228 = vsyncpa [#allocation3], 1 }
  0xb4   :  { %229 = vsyncpa [#allocation6], 1 }
  0xb5   :  { %230 = vsyncpa [#allocation4], 1 }

</bundles_post_ra>
